<compile_context>
chip_gen: v6e
topology: v6e:2x2x1
jax: 0.10.0
libtpu: 0.0.40
codegen_flags: <defaults>
</compile_context>

<pallas_src>
import jax
import jax.numpy as jnp
from jax.experimental import pallas as pl
from jax.experimental.pallas import tpu as pltpu


# ---------------------------------------------------------------------------
# Fast path: pure HBM->HBM DMA copy (no VMEM / vreg involvement at all).
# ---------------------------------------------------------------------------
def _make_concat_dma_kernel(rows_per_prog, slab_rows):
    """Build a DMA-only concat kernel.

    rows_per_prog: static rows handled by each grid program (TC shard).
    slab_rows:     static list of (row_offset_within_program, n_rows).  Every
                   slab issues two DMAs (x1 slab, x2 slab); all starts are
                   issued before any wait so up to 2*len(slab_rows) transfers
                   are outstanding per program.
    """
    num_slabs = len(slab_rows)

    def kernel(x1_hbm, x2_hbm, o_hbm, sem):
        n1 = x1_hbm.shape[1]
        n2 = x2_hbm.shape[1]
        base = pl.program_id(0) * rows_per_prog
        copies = []
        for s, (off, nr) in enumerate(slab_rows):
            rows = pl.ds(base + off, nr)
            copies.append(
                pltpu.make_async_copy(
                    x1_hbm.at[rows, :], o_hbm.at[rows, pl.ds(0, n1)], sem.at[2 * s]
                )
            )
            copies.append(
                pltpu.make_async_copy(
                    x2_hbm.at[rows, :], o_hbm.at[rows, pl.ds(n1, n2)], sem.at[2 * s + 1]
                )
            )
        # Issue every start before any wait so the transfers overlap.
        for cp in copies:
            cp.start()
        for cp in copies:
            cp.wait()

    return kernel, num_slabs


def _concat_dma(x1f, x2f):
    B, n1 = x1f.shape
    _, n2 = x2f.shape
    itemsize = jnp.dtype(x1f.dtype).itemsize
    total_bytes = B * (n1 + n2) * itemsize

    # Shard the copy across 2 TensorCores when there is enough data for it to
    # matter (helps v7x's 2 TCs approach 3.2 TB/s; a size-1 grid is free).
    num_progs = 2 if (B % 2 == 0 and total_bytes >= (4 << 20)) else 1
    rows_per_prog = B // num_progs

    # Split each program's copy into a few row slabs so several DMA
    # descriptors are outstanding at once.
    bytes_per_prog = total_bytes // num_progs
    target_slab_bytes = 2 << 20
    num_slabs = max(1, min(4, rows_per_prog, bytes_per_prog // target_slab_bytes))
    base_rows, rem = divmod(rows_per_prog, num_slabs)
    slab_rows, off = [], 0
    for s in range(num_slabs):
        nr = base_rows + (1 if s < rem else 0)
        slab_rows.append((off, nr))
        off += nr

    kernel, nslabs = _make_concat_dma_kernel(rows_per_prog, slab_rows)
    cost = pl.CostEstimate(flops=0, transcendentals=0, bytes_accessed=2 * total_bytes)

    return pl.pallas_call(
        kernel,
        out_shape=jax.ShapeDtypeStruct((B, n1 + n2), x1f.dtype),
        grid=(num_progs,),
        in_specs=[
            pl.BlockSpec(memory_space=pl.ANY),
            pl.BlockSpec(memory_space=pl.ANY),
        ],
        out_specs=pl.BlockSpec(memory_space=pl.ANY),
        scratch_shapes=[pltpu.SemaphoreType.DMA((2 * nslabs,))],
        compiler_params=pltpu.CompilerParams(dimension_semantics=("parallel",)),
        cost_estimate=cost,
    )(x1f, x2f)


# ---------------------------------------------------------------------------
# Fallback: row-tiled copy through VMEM (misaligned seam / very skinny rows).
# ---------------------------------------------------------------------------
def _concat_vmem_kernel(x1_ref, x2_ref, o_ref):
    n1 = x1_ref.shape[1]
    # x1 lands at column 0 -> plain lane-dense stores; only the x2 slab may
    # need masked stores at the seam.
    o_ref[:, :n1] = x1_ref[...]
    o_ref[:, n1:] = x2_ref[...]
    # TODO(synk): for packed dtypes (bf16/int8) with a misaligned seam,
    # confine masked/rolled stores to the single partial vreg at the boundary
    # (or pltpu.bitcast-pack to u32) instead of offsetting the whole x2 slab.


def _concat_vmem(x1f, x2f):
    B, n1 = x1f.shape
    _, n2 = x2f.shape
    itemsize = jnp.dtype(x1f.dtype).itemsize
    width = n1 + n2
    total_bytes = B * width * itemsize

    # Row-block size: keep live block bytes (inputs + output) under ~4 MiB so
    # the double-buffered footprint stays well inside v7x's scoped VMEM.
    budget = 4 << 20
    bytes_per_row = 2 * width * itemsize
    max_rb = budget // max(1, bytes_per_row)
    if max_rb >= B:
        rb = B
    elif max_rb >= 8:
        rb = (max_rb // 8) * 8  # keep the sublane dim a multiple of 8
    else:
        # Rows too wide to stage even 8 at a time within budget.
        # TODO(synk): lane-tile x1/x2 separately with an explicit seam handler.
        return jnp.concatenate([x1f, x2f], axis=1)

    grid = pl.cdiv(B, rb)
    cost = pl.CostEstimate(flops=0, transcendentals=0, bytes_accessed=2 * total_bytes)

    return pl.pallas_call(
        _concat_vmem_kernel,
        out_shape=jax.ShapeDtypeStruct((B, width), x1f.dtype),
        grid=(grid,),
        in_specs=[
            pl.BlockSpec((rb, n1), lambda i: (i, 0)),
            pl.BlockSpec((rb, n2), lambda i: (i, 0)),
        ],
        out_specs=pl.BlockSpec((rb, width), lambda i: (i, 0)),
        compiler_params=pltpu.CompilerParams(
            dimension_semantics=("parallel",),
            vmem_limit_bytes=32 * 1024 * 1024,
        ),
        cost_estimate=cost,
    )(x1f, x2f)


# ---------------------------------------------------------------------------
# Public entry point: Concat.forward equivalent.
# ---------------------------------------------------------------------------
def concat_forward(x1, x2, *, force_pallas=False):
    """cat([x1.reshape(B,-1), x2.reshape(B,-1)], dim=1)."""
    assert x1.dtype == x2.dtype, "torch.cat requires matching dtypes"
    B = x1.shape[0]
    assert x2.shape[0] == B, "batch dims must match"

    # Row-major flatten, identical to torch .view(B, -1) on contiguous NCHW.
    x1f = jnp.reshape(x1, (B, -1))
    x2f = jnp.reshape(x2, (B, -1))
    n1, n2 = x1f.shape[1], x2f.shape[1]
    itemsize = jnp.dtype(x1.dtype).itemsize
    total_bytes = B * (n1 + n2) * itemsize

    # Small-size bypass: a µs-scale pallas_call dispatch dominates tiny copies;
    # XLA's fused concat is strictly cheaper there.
    if not force_pallas and total_bytes < (2 << 20):
        return jnp.concatenate([x1f, x2f], axis=1)

    # DMA fast path: x2 lands at a per-row byte offset of n1*itemsize; only
    # word (4 B) alignment of that offset is required (no 128-lane constraint
    # for HBM DMAs).  Also avoid the strided path for pathologically small
    # per-row bursts (unless B == 1, where each copy is fully contiguous).
    seam_word_aligned = (n1 * itemsize) % 4 == 0
    decent_bursts = (B == 1) or (min(n1, n2) * itemsize >= 512)
    if seam_word_aligned and decent_bursts:
        return _concat_dma(x1f, x2f)
    return _concat_vmem(x1f, x2f)


if __name__ == "__main__":
    key = jax.random.PRNGKey(0)
    k1, k2, k3, k4 = jax.random.split(key, 4)

    def ref_concat(a, b):
        return jnp.concatenate(
            [a.reshape(a.shape[0], -1), b.reshape(b.shape[0], -1)], axis=1
        )

    # 1) Module-like NCHW shapes; force the Pallas DMA fast path.
    x1 = jax.random.normal(k1, (2, 4, 16, 16), dtype=jnp.float32)
    x2 = jax.random.normal(k2, (2, 2, 16, 16), dtype=jnp.float32)
    out = jax.block_until_ready(concat_forward(x1, x2, force_pallas=True))
    ref = ref_concat(x1, x2)
    assert out.shape == ref.shape, (out.shape, ref.shape)
    assert jnp.array_equal(out, ref), "DMA fast path mismatch vs reference"

    # 2) Skinny-row case -> exercises the row-tiled VMEM fallback.
    y1 = jax.random.normal(k3, (16, 64), dtype=jnp.float32)
    y2 = jax.random.normal(k4, (16, 32), dtype=jnp.float32)
    out2 = jax.block_until_ready(concat_forward(y1, y2, force_pallas=True))
    assert jnp.array_equal(out2, ref_concat(y1, y2)), "VMEM fallback mismatch"

    # 3) Default dispatch (tiny input -> XLA bypass).
    out3 = jax.block_until_ready(concat_forward(x1, x2))
    assert jnp.array_equal(out3, ref), "small-size bypass mismatch"

    print("KERNEL_OK")
</pallas_src>

<mosaic_0001>
module attributes {stable_mosaic.version = 11 : i64} {
  func.func @kernel(%arg0: i32, %arg1: memref<2x1024xf32, #tpu.memory_space<any>>, %arg2: memref<2x512xf32, #tpu.memory_space<any>>, %arg3: memref<2x1536xf32, #tpu.memory_space<any>>, %arg4: memref<2x!tpu.dma_semaphore, #tpu.memory_space<semaphore_mem>>) attributes {dimension_semantics = [#tpu.dimension_semantics<parallel>], iteration_bounds = array<i64: 1>, scalar_prefetch = 0 : i64, scratch_operands = 1 : i64, tpu.core_type = #tpu.core_type<tc>, window_params = [{}, {}, {}]} {
    %c2_i32 = arith.constant 2 : i32
    %0 = arith.muli %arg0, %c2_i32 : i32
    %c0_i32 = arith.constant 0 : i32
    %1 = arith.addi %0, %c0_i32 : i32
    %c0_i32_0 = arith.constant 0 : i32
    %c0_i32_1 = arith.constant 0 : i32
    %2 = tpu.memref_slice %arg1[%1, %c0_i32_1] : memref<2x1024xf32, #tpu.memory_space<any>> -> memref<2x1024xf32, #tpu.memory_space<any>>
    %c0_i32_2 = arith.constant 0 : i32
    %3 = tpu.memref_slice %arg3[%1, %c0_i32_2] : memref<2x1536xf32, #tpu.memory_space<any>> -> memref<2x1024xf32, #tpu.memory_space<any>>
    %4 = tpu.memref_slice %arg4[%c0_i32_0] : memref<2x!tpu.dma_semaphore, #tpu.memory_space<semaphore_mem>> -> memref<1x!tpu.dma_semaphore, #tpu.memory_space<semaphore_mem>>
    %5 = tpu.memref_squeeze %4 : memref<1x!tpu.dma_semaphore, #tpu.memory_space<semaphore_mem>> -> memref<!tpu.dma_semaphore, #tpu.memory_space<semaphore_mem>>
    tpu.enqueue_dma source(%2 : memref<2x1024xf32, #tpu.memory_space<any>>) target(%3 : memref<2x1024xf32, #tpu.memory_space<any>>) target_semaphore(%5 : memref<!tpu.dma_semaphore, #tpu.memory_space<semaphore_mem>>)
    %c1_i32 = arith.constant 1 : i32
    %c0_i32_3 = arith.constant 0 : i32
    %6 = tpu.memref_slice %arg2[%1, %c0_i32_3] : memref<2x512xf32, #tpu.memory_space<any>> -> memref<2x512xf32, #tpu.memory_space<any>>
    %c1024_i32 = arith.constant 1024 : i32
    %7 = tpu.memref_slice %arg3[%1, %c1024_i32] : memref<2x1536xf32, #tpu.memory_space<any>> -> memref<2x512xf32, #tpu.memory_space<any>>
    %8 = tpu.memref_slice %arg4[%c1_i32] : memref<2x!tpu.dma_semaphore, #tpu.memory_space<semaphore_mem>> -> memref<1x!tpu.dma_semaphore, #tpu.memory_space<semaphore_mem>>
    %9 = tpu.memref_squeeze %8 : memref<1x!tpu.dma_semaphore, #tpu.memory_space<semaphore_mem>> -> memref<!tpu.dma_semaphore, #tpu.memory_space<semaphore_mem>>
    tpu.enqueue_dma source(%6 : memref<2x512xf32, #tpu.memory_space<any>>) target(%7 : memref<2x512xf32, #tpu.memory_space<any>>) target_semaphore(%9 : memref<!tpu.dma_semaphore, #tpu.memory_space<semaphore_mem>>)
    %c0_i32_4 = arith.constant 0 : i32
    %c0_i32_5 = arith.constant 0 : i32
    %10 = tpu.memref_slice %arg1[%1, %c0_i32_5] : memref<2x1024xf32, #tpu.memory_space<any>> -> memref<2x1024xf32, #tpu.memory_space<any>>
    %c0_i32_6 = arith.constant 0 : i32
    %11 = tpu.memref_slice %arg3[%1, %c0_i32_6] : memref<2x1536xf32, #tpu.memory_space<any>> -> memref<2x1024xf32, #tpu.memory_space<any>>
    %12 = tpu.memref_slice %arg4[%c0_i32_4] : memref<2x!tpu.dma_semaphore, #tpu.memory_space<semaphore_mem>> -> memref<1x!tpu.dma_semaphore, #tpu.memory_space<semaphore_mem>>
    %13 = tpu.memref_squeeze %12 : memref<1x!tpu.dma_semaphore, #tpu.memory_space<semaphore_mem>> -> memref<!tpu.dma_semaphore, #tpu.memory_space<semaphore_mem>>
    tpu.wait_dma2 semaphore(%13 : memref<!tpu.dma_semaphore, #tpu.memory_space<semaphore_mem>>) src(%10 : memref<2x1024xf32, #tpu.memory_space<any>>) dst(%11 : memref<2x1024xf32, #tpu.memory_space<any>>)
    %c1_i32_7 = arith.constant 1 : i32
    %c0_i32_8 = arith.constant 0 : i32
    %14 = tpu.memref_slice %arg2[%1, %c0_i32_8] : memref<2x512xf32, #tpu.memory_space<any>> -> memref<2x512xf32, #tpu.memory_space<any>>
    %c1024_i32_9 = arith.constant 1024 : i32
    %15 = tpu.memref_slice %arg3[%1, %c1024_i32_9] : memref<2x1536xf32, #tpu.memory_space<any>> -> memref<2x512xf32, #tpu.memory_space<any>>
    %16 = tpu.memref_slice %arg4[%c1_i32_7] : memref<2x!tpu.dma_semaphore, #tpu.memory_space<semaphore_mem>> -> memref<1x!tpu.dma_semaphore, #tpu.memory_space<semaphore_mem>>
    %17 = tpu.memref_squeeze %16 : memref<1x!tpu.dma_semaphore, #tpu.memory_space<semaphore_mem>> -> memref<!tpu.dma_semaphore, #tpu.memory_space<semaphore_mem>>
    tpu.wait_dma2 semaphore(%17 : memref<!tpu.dma_semaphore, #tpu.memory_space<semaphore_mem>>) src(%14 : memref<2x512xf32, #tpu.memory_space<any>>) dst(%15 : memref<2x512xf32, #tpu.memory_space<any>>)
    return
  }
}

</mosaic_0001>

<bundles_post_ra>
// kernel: tpu_custom_call.1
= control target key start
LH: loop header
LB: loop body
LE: loop exit
PB: predicated region body
PF: predicated region fallthrough
CT: control target
= control target key end

     0   :  { %s77_s12 = smov [#allocation2]   ;;  %s78_s13 = smov 131072   ;;  %s108_s0 = inlined_call_operand.hbm [shape: f32[2,1024], index: 0, kind: input, shape index: {}]   ;;  %s109_s2 = inlined_call_operand.hbm [shape: f32[2,1536], index: 2, kind: output, shape index: {}]   ;;  %s110_s1 = inlined_call_operand.hbm [shape: f32[2,512], index: 1, kind: input, shape index: {}]  }
   0x1   :  { %s66_s11 = scalar_lea.hbm %s109_s2, 256  ;;  %s79_s14 = smov 0  }
   0x2   :  { %22 = dma.general %s108_s0, 256, %s109_s2, %s77_s12, %s78_s13, [#allocation4], %s79_s14, 0  }
   0x3   :  { %s80_s19 = smov [#allocation2 + $0x1]  }
   0x4   :  { %36 = dma.general %s110_s1, 128, %s66_s11, %s80_s19, %s78_s13, [#allocation6], %s79_s14, 0  }
   0x5   :  { %73 = dma.done.wait [#allocation2], 256 }
   0x6   :  { %74 = vsyncadd [#allocation2], 4294967040 }
   0x7   :  { %75 = dma.done.wait [#allocation2 + $0x1], 128 }
   0x8   :  { %76 = vsyncadd [#allocation2 + $0x1], 4294967168 }
   0x9   :  { %44 = vsyncmov [#allocation2] }
   0xc   :  { %s45_s22 = vpop.sfrf %44 }
   0xd   :  { %p67_p0 = scmp.ne.s32.totalorder %s45_s22, 0 }
   0xf   :  { %49 = shalt.err (%p67_p0)  }
  0x10   :  { %51 = vsyncmov [#allocation2 + $0x1] }
  0x13   :  { %s52_s23 = vpop.sfrf %51 }
  0x14   :  { %p68_p1 = scmp.ne.s32.totalorder %s52_s23, 0 }
  0x16   :  { %56 = shalt.err (%p68_p1)  }

</bundles_post_ra>
